<compile_context>
chip_gen: v7x
topology: tpu7x:2x2x1
jax: 0.10.0
libtpu: 0.0.40
codegen_flags: <defaults>
</compile_context>

<pallas_src>
import functools

import jax
import jax.numpy as jnp
from jax.experimental import pallas as pl
from jax.experimental.pallas import tpu as pltpu

LANE = 128  # TPU lane width — last dim of compute/store tiles should be a multiple of this.


def _round_up(n, m):
    return ((n + m - 1) // m) * m


def mlp_kernel(x_ref, y_ref, w1x_ref, w1y_ref, b1_ref, w2_ref, b2_ref, out_ref):
    # x_ref   : (1, token_dim)
    # y_ref   : (1, pos_dim)
    # w1x_ref : (token_dim, hid_pad)   rows of W1.T that multiply x   (fused concat)
    # w1y_ref : (pos_dim,   hid_pad)   rows of W1.T that multiply y
    # b1_ref  : (1, hid_pad)
    # w2_ref  : (hid_pad, out_pad)
    # b2_ref  : (1, out_pad)
    # out_ref : (1, out_pad)           lane-dense (128-wide) store
    h = jnp.dot(x_ref[...], w1x_ref[...], preferred_element_type=jnp.float32)
    h = h + jnp.dot(y_ref[...], w1y_ref[...], preferred_element_type=jnp.float32)
    h = jnp.maximum(h + b1_ref[...], 0.0)  # bias + ReLU
    out_ref[...] = (
        jnp.dot(h, w2_ref[...], preferred_element_type=jnp.float32) + b2_ref[...]
    )


def prepare_params(w1_t, b1, w2_t, b2, token_dim):
    """One-time parameter prep (amortized): pad hidden/output dims to lane width (128)
    with zeros and split W1 into the x-rows / y-rows blocks for the fused concat."""
    input_size, hidden = w1_t.shape
    _, output = w2_t.shape
    hid_p = _round_up(hidden, LANE)
    out_p = _round_up(output, LANE)

    w1_p = jnp.zeros((input_size, hid_p), jnp.float32).at[:, :hidden].set(w1_t)
    b1_p = jnp.zeros((1, hid_p), jnp.float32).at[:, :hidden].set(
        jnp.asarray(b1, jnp.float32).reshape(1, -1)
    )
    w2_p = jnp.zeros((hid_p, out_p), jnp.float32).at[:hidden, :output].set(w2_t)
    b2_p = jnp.zeros((1, out_p), jnp.float32).at[:, :output].set(
        jnp.asarray(b2, jnp.float32).reshape(1, -1)
    )

    w1x_p = w1_p[:token_dim]  # rows multiplying the token vector x
    w1y_p = w1_p[token_dim:]  # rows multiplying the position vector y
    return w1x_p, w1y_p, b1_p, w2_p, b2_p, output


@functools.partial(jax.jit, static_argnames=("output_size",))
def mlp_forward(x, y, w1x_p, w1y_p, b1_p, w2_p, b2_p, output_size):
    """Replicates MLP.forward: cat(x, y) -> Linear -> ReLU -> Linear -> squeeze(0)."""
    x2 = x.astype(jnp.float32)[None, :]
    y2 = y.astype(jnp.float32)[None, :]

    hid_p = w1x_p.shape[1]
    out_p = w2_p.shape[1]
    in_sz = w1x_p.shape[0] + w1y_p.shape[0]

    flops = 2 * (in_sz * hid_p + hid_p * out_p)
    bytes_accessed = 4 * (
        x2.size + y2.size + w1x_p.size + w1y_p.size + b1_p.size
        + w2_p.size + b2_p.size + out_p
    )

    vmem_spec = pl.BlockSpec(memory_space=pltpu.MemorySpace.VMEM)
    out = pl.pallas_call(
        mlp_kernel,
        out_shape=jax.ShapeDtypeStruct((1, out_p), jnp.float32),
        in_specs=[vmem_spec] * 7,
        out_specs=vmem_spec,
        cost_estimate=pl.CostEstimate(
            flops=flops, transcendentals=0, bytes_accessed=bytes_accessed
        ),
    )(x2, y2, w1x_p, w1y_p, b1_p, w2_p, b2_p)

    # Slice off the lane padding; .squeeze(0) from the torch forward.
    return out[0, :output_size]


if __name__ == "__main__":
    # Small shapes consistent with the module: token vec = 16, position vec = 16
    # -> input_size = 32, hidden = 32, output = 8.
    token_dim = 16
    pos_dim = 16
    input_size = token_dim + pos_dim
    hidden_size = 32
    output_size = 8

    key = jax.random.PRNGKey(0)
    k_x, k_y, k_w1, k_b1, k_w2, k_b2 = jax.random.split(key, 6)

    # Deterministic synthetic parameters (Kaiming-uniform-ish range, like nn.Linear),
    # stored pre-transposed: (in_features, out_features).
    bound1 = 1.0 / (input_size ** 0.5)
    bound2 = 1.0 / (hidden_size ** 0.5)
    w1_t = jax.random.uniform(
        k_w1, (input_size, hidden_size), jnp.float32, -bound1, bound1
    )
    b1 = jax.random.uniform(k_b1, (hidden_size,), jnp.float32, -bound1, bound1)
    w2_t = jax.random.uniform(
        k_w2, (hidden_size, output_size), jnp.float32, -bound2, bound2
    )
    b2 = jax.random.uniform(k_b2, (output_size,), jnp.float32, -bound2, bound2)

    # One-time padded/split parameter layout.
    w1x_p, w1y_p, b1_p, w2_p, b2_p, out_sz = prepare_params(
        w1_t, b1, w2_t, b2, token_dim
    )

    # Deterministic example inputs (the two vectors the forward concatenates).
    x = jax.random.normal(k_x, (token_dim,), jnp.float32)
    y = jax.random.normal(k_y, (pos_dim,), jnp.float32)

    out = mlp_forward(x, y, w1x_p, w1y_p, b1_p, w2_p, b2_p, output_size=out_sz)
    out = jax.block_until_ready(out)

    # Pure-JAX reference check (unpadded math).
    inp = jnp.concatenate([x[None, :], y[None, :]], axis=-1)
    ref = jnp.maximum(inp @ w1_t + b1[None, :], 0.0) @ w2_t + b2[None, :]
    assert out.shape == (output_size,)
    assert jnp.allclose(out, ref[0], atol=1e-5, rtol=1e-5)

    print("KERNEL_OK")
</pallas_src>

<mosaic_0001>
module attributes {stable_mosaic.version = 11 : i64} {
  func.func @mlp_kernel(%arg0: memref<1x16xf32, #tpu.memory_space<vmem>>, %arg1: memref<1x16xf32, #tpu.memory_space<vmem>>, %arg2: memref<16x128xf32, #tpu.memory_space<vmem>>, %arg3: memref<16x128xf32, #tpu.memory_space<vmem>>, %arg4: memref<1x128xf32, #tpu.memory_space<vmem>>, %arg5: memref<128x128xf32, #tpu.memory_space<vmem>>, %arg6: memref<1x128xf32, #tpu.memory_space<vmem>>, %arg7: memref<1x128xf32, #tpu.memory_space<vmem>>) attributes {dimension_semantics = [], scalar_prefetch = 0 : i64, scratch_operands = 0 : i64, tpu.core_type = #tpu.core_type<tc>} {
    %c0 = arith.constant 0 : index
    %c0_0 = arith.constant 0 : index
    %0 = vector.load %arg0[%c0, %c0_0] : memref<1x16xf32, #tpu.memory_space<vmem>>, vector<1x16xf32>
    %c0_1 = arith.constant 0 : index
    %c0_2 = arith.constant 0 : index
    %1 = vector.load %arg2[%c0_1, %c0_2] : memref<16x128xf32, #tpu.memory_space<vmem>>, vector<16x128xf32>
    %cst = arith.constant dense<0.000000e+00> : vector<1x128xf32>
    %2 = tpu.matmul %0, %1, %cst {dimension_numbers = #tpu.dot_dimension_numbers<[1], [0], [0], [1], [0, 0, 1, 1], [], []>} : vector<1x16xf32>, vector<16x128xf32>, vector<1x128xf32> -> vector<1x128xf32>
    %c0_3 = arith.constant 0 : index
    %c0_4 = arith.constant 0 : index
    %3 = vector.load %arg1[%c0_3, %c0_4] : memref<1x16xf32, #tpu.memory_space<vmem>>, vector<1x16xf32>
    %c0_5 = arith.constant 0 : index
    %c0_6 = arith.constant 0 : index
    %4 = vector.load %arg3[%c0_5, %c0_6] : memref<16x128xf32, #tpu.memory_space<vmem>>, vector<16x128xf32>
    %cst_7 = arith.constant dense<0.000000e+00> : vector<1x128xf32>
    %5 = tpu.matmul %3, %4, %cst_7 {dimension_numbers = #tpu.dot_dimension_numbers<[1], [0], [0], [1], [0, 0, 1, 1], [], []>} : vector<1x16xf32>, vector<16x128xf32>, vector<1x128xf32> -> vector<1x128xf32>
    %6 = arith.addf %2, %5 : vector<1x128xf32>
    %c0_8 = arith.constant 0 : index
    %c0_9 = arith.constant 0 : index
    %7 = vector.load %arg4[%c0_8, %c0_9] : memref<1x128xf32, #tpu.memory_space<vmem>>, vector<1x128xf32>
    %8 = arith.addf %6, %7 : vector<1x128xf32>
    %cst_10 = arith.constant 0.000000e+00 : f32
    %9 = vector.broadcast %cst_10 : f32 to vector<1x128xf32>
    %10 = arith.maximumf %8, %9 : vector<1x128xf32>
    %c0_11 = arith.constant 0 : index
    %c0_12 = arith.constant 0 : index
    %11 = vector.load %arg5[%c0_11, %c0_12] : memref<128x128xf32, #tpu.memory_space<vmem>>, vector<128x128xf32>
    %cst_13 = arith.constant dense<0.000000e+00> : vector<1x128xf32>
    %12 = tpu.matmul %10, %11, %cst_13 {dimension_numbers = #tpu.dot_dimension_numbers<[1], [0], [0], [1], [0, 0, 1, 1], [], []>} : vector<1x128xf32>, vector<128x128xf32>, vector<1x128xf32> -> vector<1x128xf32>
    %c0_14 = arith.constant 0 : index
    %c0_15 = arith.constant 0 : index
    %13 = vector.load %arg6[%c0_14, %c0_15] : memref<1x128xf32, #tpu.memory_space<vmem>>, vector<1x128xf32>
    %14 = arith.addf %12, %13 : vector<1x128xf32>
    %c0_16 = arith.constant 0 : index
    %c0_17 = arith.constant 0 : index
    %15 = vector.load %arg7[%c0_16, %c0_17] : memref<1x128xf32, #tpu.memory_space<vmem>>, vector<1x128xf32>
    tpu.vector_store %arg7[%c0_16, %c0_17], %14 {strides = array<i32>} : memref<1x128xf32, #tpu.memory_space<vmem>>, vector<1x128xf32>,
    return
  }
}

</mosaic_0001>

<bundles_post_ra>
// kernel: mlp_forward.1
= control target key start
LH: loop header
LB: loop body
LE: loop exit
PB: predicated region body
PF: predicated region fallthrough
CT: control target
= control target key end

     0   :  { %12 = vsyncpa [#allocation3], 0  ;;  %s560_s0 = inlined_call_operand.vmem [shape: f32[1,16], index: 0, kind: input, shape index: {}]   ;;  %s561_s1 = inlined_call_operand.vmem [shape: f32[1,16], index: 1, kind: input, shape index: {}]   ;;  %s562_s2 = inlined_call_operand.hbm [shape: f32[16,128], index: 2, kind: input, shape index: {}]   ;;  %s563_s3 = inlined_call_operand.vmem [shape: f32[16,128], index: 3, kind: input, shape index: {}]   ;;  %s564_s4 = inlined_call_operand.vmem [shape: f32[1,128], index: 4, kind: input, shape index: {}]   ;;  %s565_s5 = inlined_call_operand.hbm [shape: f32[128,128], index: 5, kind: input, shape index: {}]   ;;  %s566_s6 = inlined_call_operand.vmem [shape: f32[1,128], index: 6, kind: input, shape index: {}]   ;;  %s567_s7 = inlined_call_operand.vmem [shape: f32[1,128], index: 7, kind: output, shape index: {}]  }
   0x1   :  { %13 = vsyncpa [#allocation5], 0  ;;  %s463_s24 = smov [#allocation2]   ;;  %s415_s28 = scalar_lea.hbm %s562_s2, 256 }
   0x2   :  { %s23_s25 = sshll.u32 %s463_s24, 4  ;;  %p416_p0 = scmp.ne.s32.totalorder %s562_s2, %s415_s28  ;;  %s24_s25 = int_to_ptr.vmem [resolvable:$true] %s23_s25 }
   0x3   :  { %p419_p1 = scmp.lt.u32.totalorder %s415_s28, %s562_s2 }
   0x5   :  { %p421_p2 = pnand %p419_p1, %p416_p0 }
   0x7   :  { %424 = shalt.err (!%p421_p2)
}
   0x8   :  { %s425_s10 = scalar_lea.vmem %s24_s25, 256  ;;  %p430_p4 = scmp.lt.s32.totalorder %s24_s25, %s24_s25 }
   0x9   :  { %p426_p3 = scmp.ne.s32.totalorder %s24_s25, %s425_s10  ;;  %p431_p5 = scmp.lt.s32.totalorder %s425_s10, %s425_s10 }
   0xb   :  { %p432_p6 = por %p431_p5, %p430_p4 }
   0xd   :  { %p433_p7 = pnand %p432_p6, %p426_p3 }
   0xf   :  { %436 = shalt.err (!%p433_p7)
}
  0x10   :  { %s464_s11 = smov 128   ;;  %s465_s12 = smov 8  }
  0x11   :  { %29 = dma.hbm_to_vmem [thread:$0]  %s562_s2, 256, %s24_s25, [#allocation3], %s464_s11, %s464_s11, %s465_s12  }
  0x12   :  { %s466_s15 = smov [#allocation4]   ;;  %s437_s19 = scalar_lea.hbm %s565_s5, 2048 }
  0x13   :  { %s39_s16 = sshll.u32 %s466_s15, 4  ;;  %p438_p8 = scmp.ne.s32.totalorder %s565_s5, %s437_s19  ;;  %s40_s16 = int_to_ptr.vmem [resolvable:$true] %s39_s16 }
  0x14   :  { %p441_p9 = scmp.lt.u32.totalorder %s437_s19, %s565_s5 }
  0x16   :  { %p443_p10 = pnand %p441_p9, %p438_p8 }
  0x18   :  { %446 = shalt.err (!%p443_p10)
}
  0x19   :  { %s447_s24 = scalar_lea.vmem %s40_s16, 2048  ;;  %p452_p12 = scmp.lt.s32.totalorder %s40_s16, %s40_s16 }
  0x1a   :  { %p448_p11 = scmp.ne.s32.totalorder %s40_s16, %s447_s24  ;;  %p453_p13 = scmp.lt.s32.totalorder %s447_s24, %s447_s24 }
  0x1c   :  { %p454_p0 = por %p453_p13, %p452_p12 }
  0x1e   :  { %p455_p1 = pnand %p454_p0, %p448_p11 }
  0x20   :  { %458 = shalt.err (!%p455_p1)
}
  0x21   :  { %45 = dma.hbm_to_vmem [thread:$0]  %s565_s5, 2048, %s40_s16, [#allocation5], %s464_s11, %s464_s11, %s465_s12  }
  0x22   :  { %459 = dma.done.wait [#allocation3], 256  }
  0x23   :  { %460 = vsyncadd [#allocation3], 4294967040 }
  0x24   :  { %461 = dma.done.wait [#allocation5], 2048  }
  0x25   :  { %462 = vsyncadd [#allocation5], 4294965248  ;;  %v467_v0 = vmov 0.0|0.0   ;;  %vm468_vm0 = vmmov 0   ;;  %v469_v1 = vmov 0.0   ;;  %v58_v2 = vld [vmem:[%s563_s3] sm:$0xff] }
  0x26   :  { %378 = vmatprep.subr.bf16.mxu1 %v467_v0  ;;  %333 = vmatprep.mubr.msk.f32.mxu1 %vm468_vm0, %v469_v1  ;;  %v59_v3 = vld [vmem:[%s563_s3 + $0x8] sm:$0xff]  ;;  %v55_v5 = vld [vmem:[#allocation2] sm:$0xff]  ;;  %v210_v7 = vld [vmem:[#allocation4] sm:$0xff]  ;;  %vm60_vm1 = vcmask 130048  }
  0x27   :  { %384 = vmatprep.subr.bf16.mxu0 %v467_v0  ;;  %375 = vmatprep.mubr.msk.f32.mxu0 %vm468_vm0, %v469_v1  ;;  %v379_v4 = vpack.c.bf16 %v59_v3, %v58_v2  ;;  %v56_v6 = vld [vmem:[#allocation2 + $0x8] sm:$0xff]  ;;  %v211_v8 = vld [vmem:[#allocation4 + $0x8] sm:$0xff]  ;;  %v212_v9 = vld [vmem:[#allocation4 + $0x10] sm:$0xff] }
  0x28   :  { %v57_v10 = vld [vmem:[%s561_s1] sm:$0x1]  ;;  %v382_v11 = vpack.c.bf16 %v56_v6, %v55_v5  ;;  %v385_v12 = vpack.c.bf16 %v211_v8, %v210_v7  ;;  %v213_v13 = vld [vmem:[#allocation4 + $0x18] sm:$0xff]  ;;  %v214_v15 = vld [vmem:[#allocation4 + $0x20] sm:$0xff] }
  0x29   :  { %380 = vmatpush3.bf16.msra.mxu1 %v379_v4  ;;  %v388_v14 = vpack.c.bf16 %v213_v13, %v212_v9  ;;  %v215_v16 = vld [vmem:[#allocation4 + $0x28] sm:$0xff]  ;;  %v54_v17 = vld [vmem:[%s560_s0] sm:$0x1]  ;;  %v217_v20 = vld [vmem:[#allocation4 + $0x38] sm:$0xff] }
  0x2a   :  { %381 = vmatprep.subr.bf16.mxu1 %v467_v0  ;;  %386 = vmatpush3.bf16.msra.mxu0 %v385_v12  ;;  %v391_v18 = vpack.c.bf16 %v215_v16, %v214_v15  ;;  %v216_v19 = vld [vmem:[#allocation4 + $0x30] sm:$0xff]  ;;  %v218_v22 = vld [vmem:[#allocation4 + $0x40] sm:$0xff]  ;;  %v219_v23 = vld [vmem:[#allocation4 + $0x48] sm:$0xff] }
  0x2b   :  { %387 = vmatprep.subr.bf16.mxu0 %v467_v0  ;;  %v394_v21 = vpack.c.bf16 %v217_v20, %v216_v19  ;;  %v397_v24 = vpack.c.bf16 %v219_v23, %v218_v22  ;;  %v220_v25 = vld [vmem:[#allocation4 + $0x50] sm:$0xff]  ;;  %v221_v26 = vld [vmem:[#allocation4 + $0x58] sm:$0xff]  ;;  %v222_v28 = vld [vmem:[#allocation4 + $0x60] sm:$0xff] }
  0x2c   :  { %334 = vmatmul.mubr.msk.f32.vlgmr.msra.gmra.mrb[0].mxu1 %vm60_vm1, %v57_v10  ;;  %v400_v27 = vpack.c.bf16 %v221_v26, %v220_v25  ;;  %v223_v29 = vld [vmem:[#allocation4 + $0x68] sm:$0xff]  ;;  %v224_v31 = vld [vmem:[#allocation4 + $0x70] sm:$0xff]  ;;  %v225_v32 = vld [vmem:[#allocation4 + $0x78] sm:$0xff] }
  0x2d   :  { %383 = vmatpush3.bf16.msra.mxu1 %v382_v11  ;;  %340 = vmatprep.mubr.msk.f32.mxu1 %vm468_vm0, %v469_v1  ;;  %v403_v30 = vpack.c.bf16 %v223_v29, %v222_v28  ;;  %v406_v33 = vpack.c.bf16 %v225_v32, %v224_v31  ;;  %v207_v37 = vld [vmem:[%s564_s4] sm:$0x1] }
  0x2e   :  { %389 = vmatpush3.bf16.msra.mxu0 %v388_v14  ;;  %v226_v42 = vld [vmem:[%s566_s6] sm:$0x1] }
  0x2f   :  { %390 = vmatprep.subr.bf16.mxu0 %v467_v0 }
  0x30   :  { %341 = vmatmul.mubr.msk.f32.vlgmr.msra.gmra.mrb[2].mxu1 %vm60_vm1, %v54_v17 }
  0x32   :  { %392 = vmatpush3.bf16.msra.mxu0 %v391_v18 }
  0x33   :  { %393 = vmatprep.subr.bf16.mxu0 %v467_v0 }
  0x36   :  { %395 = vmatpush3.bf16.msra.mxu0 %v394_v21 }
  0x37   :  { %396 = vmatprep.subr.bf16.mxu0 %v467_v0 }
  0x3a   :  { %398 = vmatpush3.bf16.msra.mxu0 %v397_v24 }
  0x3b   :  { %399 = vmatprep.subr.bf16.mxu0 %v467_v0 }
  0x3e   :  { %401 = vmatpush3.bf16.msra.mxu0 %v400_v27 }
  0x3f   :  { %402 = vmatprep.subr.bf16.mxu0 %v467_v0 }
  0x42   :  { %404 = vmatpush3.bf16.msra.mxu0 %v403_v30 }
  0x43   :  { %405 = vmatprep.subr.bf16.mxu0 %v467_v0 }
  0x46   :  { %407 = vmatpush3.bf16.msra.mxu0 %v406_v33 }
  0xff   :  { %v130_v34 = vpop.f32.mrb[0].mxu1 }
 0x100   :  { %v335_v35 = vpop.f32.mrb[1].mxu1 }
 0x103   :  { %v203_v36 = vpop.f32.mrb[2].mxu1 }
 0x104   :  { %v204_v38 = vadd.f32 %v203_v36, %v130_v34  ;;  %v342_v39 = vpop.f32.mrb[3].mxu1 }
 0x106   :  { %v208_v40 = vadd.f32 %v207_v37, %v204_v38 }
 0x108   :  { %v209_v41 = vmax.f32 %v208_v40, 0.0 }
 0x10a   :  { %376 = vmatmul.mubr.f32.vlgmr.msra.gmra.mrb[0].mxu0 %v209_v41 }
 0x1dd   :  { %v293_v43 = vpop.f32.mrb[0].mxu0 }
 0x1de   :  { %v294_v44 = vadd.f32 %v293_v43, %v226_v42  ;;  %v377_v45 = vpop.f32.mrb[1].mxu0 }
 0x1e0   :  { %297 = vst [vmem:[%s567_s7] sm:$0x1] %v294_v44 }
 0x1e1   :  { %302 = vsyncpa [#allocation3], 1 }
 0x1e2   :  { %303 = vsyncpa [#allocation5], 1 }

</bundles_post_ra>
